<compile_context>
chip_gen: v6e
topology: v6e:2x2x1
jax: 0.10.0
libtpu: 0.0.40
codegen_flags: <defaults>
</compile_context>

<pallas_src>
import numpy as np
import jax
import jax.numpy as jnp
from jax.experimental import pallas as pl
from jax.experimental.pallas import tpu as pltpu


# ---------------------------------------------------------------------------
# Deterministic parameter construction (mirror of init_kernels, win_type='hamming')
# ---------------------------------------------------------------------------
def init_kernels_np(win_len, win_inc, fft_len, win_type="hamming"):
    if win_type is None or win_type == "None":
        window = np.ones(win_len)
    elif win_type == "hamming":
        # scipy.signal.get_window('hamming', win_len, fftbins=True) == periodic hamming
        n = np.arange(win_len)
        window = (0.54 - 0.46 * np.cos(2.0 * np.pi * n / win_len)) ** 0.5
    else:
        raise ValueError(f"unsupported win_type {win_type}")
    N = fft_len
    fourier_basis = np.fft.rfft(np.eye(N))[:win_len]          # (win_len, N//2+1) complex
    real_kernel = np.real(fourier_basis)
    imag_kernel = np.imag(fourier_basis)
    kernel = np.concatenate([real_kernel, imag_kernel], 1).T  # (2*(N//2+1), win_len)
    kernel = kernel * window                                   # broadcast over taps
    kernel = kernel[:, None, :]                                # (2*half, 1, win_len)
    return kernel.astype(np.float32), window[None, :, None].astype(np.float32)


# ---------------------------------------------------------------------------
# Pallas kernel
# ---------------------------------------------------------------------------
def _make_stft_kernel(*, feature_type, n_shift, seg, t_tile, f_pad, half):
    """Kernel body factory.  Ref order:
         n_shift > 1 : (body, halo, w, *outs, rhs_scratch)
         n_shift == 1: (body, w, *outs)
    """
    def kernel(*refs):
        if n_shift > 1:
            body_ref, halo_ref, w_ref = refs[0], refs[1], refs[2]
            out_refs = refs[3:-1]
            rhs_ref = refs[-1]                                   # (win_len, t_tile) scratch
            body = body_ref[...]                                 # (seg, t_tile)  time on lanes
            full = jnp.concatenate([body, halo_ref[...]], axis=1)  # (seg, t_tile + 128)
            # Frame assembly: rhs[j*seg + s, t] = signal[(tile_t0 + t + j)*seg + s].
            rhs_ref[pl.ds(0, seg), :] = body
            for j in range(1, n_shift):                          # static, small
                rhs_ref[pl.ds(j * seg, seg), :] = full[:, j:j + t_tile]
            rhs = rhs_ref[...]
        else:
            body_ref, w_ref = refs[0], refs[1]
            out_refs = refs[2:]
            rhs = body_ref[...]                                  # already (win_len, t_tile)

        # Single canonical (M,K)x(K,N) matmul, f32 accumulation, lane-dense output.
        acc = jax.lax.dot_general(
            w_ref[...], rhs, dimension_numbers=(((1,), (0,)), ((), ())),
            preferred_element_type=jnp.float32)                  # (2*f_pad, t_tile)
        real = acc[:half, :]
        imag = acc[f_pad:f_pad + half, :]

        if feature_type == "complex":
            out_ref, = out_refs
            out_ref[0, :, :] = real.astype(out_ref.dtype)
            out_ref[1, :, :] = imag.astype(out_ref.dtype)
        else:
            mags_ref, phase_ref = out_refs
            mags_ref[...] = jnp.sqrt(real * real + imag * imag).astype(mags_ref.dtype)
            # TODO(synk): arctan2 is the dominant VPU cost of the 'real' path (esp.
            # v5e); FRCRN's main path uses feature_type='complex' which skips it.
            phase_ref[...] = jnp.arctan2(imag, real).astype(phase_ref.dtype)
    return kernel


# ---------------------------------------------------------------------------
# Module wrapper
# ---------------------------------------------------------------------------
class ConvSTFT:
    """Pallas-backed equivalent of the PyTorch ConvSTFT (forward only)."""

    def __init__(self, win_len, win_inc, fft_len=None, win_type="hamming",
                 feature_type="real", max_t_tile=512, compute_dtype=jnp.bfloat16,
                 vmem_limit_bytes=48 * 1024 * 1024):
        if fft_len is None:
            fft_len = int(2 ** np.ceil(np.log2(win_len)))
        assert max_t_tile in (128, 256, 512, 1024, 2048), \
            "max_t_tile must be 128 * 2**k"
        self.win_len = int(win_len)
        self.stride = int(win_inc)
        self.fft_len = int(fft_len)
        self.dim = self.fft_len
        self.feature_type = feature_type
        self.max_t_tile = int(max_t_tile)
        self.compute_dtype = compute_dtype
        self.vmem_limit_bytes = int(vmem_limit_bytes)

        self.half = self.fft_len // 2 + 1
        self.f_pad = ((self.half + 7) // 8) * 8              # sublane-aligned real/imag split

        if self.win_len % self.stride == 0:
            # Row decomposition: each tile DMAs ~1x the waveform (plus a 128-col halo).
            self.seg = self.stride
            self.n_shift = self.win_len // self.stride
            assert self.n_shift <= 128, "window spans more than the 128-col halo"
        else:
            # TODO(synk): win_inc does not divide win_len -> host-side frame
            # expansion (win_len/win_inc x HBM input traffic). A gcd-based row
            # decomposition could avoid it but is not implemented.
            self.seg = self.win_len
            self.n_shift = 1

        kernel_np, _ = init_kernels_np(self.win_len, self.stride, self.fft_len, win_type)
        w_all = kernel_np[:, 0, :]                            # (2*half, win_len)
        # Fused [real | imag] basis, each half zero-padded to a sublane-aligned
        # row offset so the accumulator split is a tile-aligned slice.
        w_pad = np.zeros((2 * self.f_pad, self.win_len), np.float32)
        w_pad[:self.half] = w_all[:self.half]
        w_pad[self.f_pad:self.f_pad + self.half] = w_all[self.half:]
        self.w_k = jnp.asarray(w_pad, dtype=compute_dtype)    # resident in VMEM

    # Pick the largest tile (<= max_t_tile) that still gives the 2-D parallel
    # grid >= ~8 steps (2 TCs on v7x + pipeline depth); never below 128 lanes.
    def _pick_t_tile(self, B, T):
        t = self.max_t_tile
        while t > 128 and B * ((T + t - 1) // t) < 8:
            t //= 2
        return max(t, 128)

    def __call__(self, inputs):
        # inputs: (B, L) or (B, 1, L) float32 -- matches the torch semantics.
        if inputs.ndim == 2:
            inputs = inputs[:, None, :]
        B, C, L = inputs.shape
        assert C == 1, "ConvSTFT expects a single input channel"
        win_len, stride = self.win_len, self.stride
        half, f_pad = self.half, self.f_pad
        seg, n_shift = self.seg, self.n_shift

        T = (L - win_len) // stride + 1
        assert T >= 1, "input too short for a single frame"
        t_tile = self._pick_t_tile(B, T)
        num_tiles = (T + t_tile - 1) // t_tile

        sig = inputs[:, 0, :]

        if win_len % stride == 0:
            halo_cols = 128 if n_shift > 1 else 0
            total_cols = num_tiles * t_tile + halo_cols
            L_pad = total_cols * seg
            if L_pad >= L:
                sig = jnp.pad(sig, ((0, 0), (0, L_pad - L)))
            else:
                sig = sig[:, :L_pad]                          # unused tail samples
            # (B, L_pad) -> (B, cols, seg) -> (B, seg, cols): one fused
            # transpose+cast pass; time ends up on the lane axis so the kernel
            # matmul is canonical with zero in-kernel transposes.
            x_t = jnp.transpose(sig.reshape(B, total_cols, seg),
                                (0, 2, 1)).astype(self.compute_dtype)
        else:
            # Fallback: explicit frame expansion, already frame-transposed.
            total_cols = num_tiles * t_tile
            needed = (total_cols - 1) * stride + win_len
            sig = jnp.pad(sig, ((0, 0), (0, max(0, needed - L))))
            idx = (np.arange(total_cols)[:, None] * stride
                   + np.arange(win_len)[None, :])             # (frames, win_len)
            x_t = jnp.transpose(sig[:, idx], (0, 2, 1)).astype(self.compute_dtype)

        # ---- pallas_call plumbing -----------------------------------------
        in_specs = [pl.BlockSpec((None, seg, t_tile), lambda b, t: (b, 0, t))]
        operands = [x_t]
        if n_shift > 1:
            bpt = t_tile // 128
            # Tiny halo window: the next 128 time columns of the same array.
            in_specs.append(pl.BlockSpec((None, seg, 128),
                                         lambda b, t: (b, 0, (t + 1) * bpt)))
            operands.append(x_t)
        in_specs.append(pl.BlockSpec((2 * f_pad, win_len), lambda b, t: (0, 0)))
        operands.append(self.w_k)

        scratch_shapes = []
        if n_shift > 1:
            scratch_shapes.append(pltpu.VMEM((win_len, t_tile), self.compute_dtype))

        compiler_params = pltpu.CompilerParams(
            dimension_semantics=("parallel", "parallel"),
            vmem_limit_bytes=self.vmem_limit_bytes)
        grid = (B, num_tiles)

        kernel = _make_stft_kernel(feature_type=self.feature_type, n_shift=n_shift,
                                   seg=seg, t_tile=t_tile, f_pad=f_pad, half=half)

        if self.feature_type == "real":
            out_shape = (jax.ShapeDtypeStruct((B, half, T), jnp.float32),
                         jax.ShapeDtypeStruct((B, half, T), jnp.float32))
            out_specs = (pl.BlockSpec((None, half, t_tile), lambda b, t: (b, 0, t)),
                         pl.BlockSpec((None, half, t_tile), lambda b, t: (b, 0, t)))
            mags, phase = pl.pallas_call(
                kernel, out_shape=out_shape, grid=grid,
                in_specs=in_specs, out_specs=out_specs,
                scratch_shapes=scratch_shapes,
                compiler_params=compiler_params)(*operands)
            return mags, phase

        elif self.feature_type == "complex":
            out_shape = jax.ShapeDtypeStruct((B, 2, half, T), jnp.float32)
            out_specs = pl.BlockSpec((None, 2, half, t_tile),
                                     lambda b, t: (b, 0, 0, t))
            out = pl.pallas_call(
                kernel, out_shape=out_shape, grid=grid,
                in_specs=in_specs, out_specs=out_specs,
                scratch_shapes=scratch_shapes,
                compiler_params=compiler_params)(*operands)
            # (B, 2, half, T) -> (B, 2*half, T) == concat([real, imag], dim=1)
            return out.reshape(B, 2 * half, T)

        else:
            raise ValueError(f"unknown feature_type {self.feature_type}")


# ---------------------------------------------------------------------------
# Pure-JAX reference (same math, no Pallas) for the sanity check
# ---------------------------------------------------------------------------
def _reference(inputs, win_len, stride, fft_len, win_type="hamming"):
    kernel_np, _ = init_kernels_np(win_len, stride, fft_len, win_type)
    half = fft_len // 2 + 1
    w = jnp.asarray(kernel_np[:, 0, :])            # (2*half, win_len)
    if inputs.ndim == 2:
        inputs = inputs[:, None, :]
    x = inputs[:, 0, :]
    L = x.shape[-1]
    T = (L - win_len) // stride + 1
    idx = np.arange(T)[:, None] * stride + np.arange(win_len)[None, :]
    frames = x[:, idx]                              # (B, T, win_len)
    out = jnp.einsum("btw,cw->bct", frames, w,
                     precision=jax.lax.Precision.HIGHEST)    # (B, 2*half, T)
    real, imag = out[:, :half], out[:, half:]
    mags = jnp.sqrt(real ** 2 + imag ** 2)
    phase = jnp.arctan2(imag, real)
    return mags, phase, real, imag


if __name__ == "__main__":
    key = jax.random.PRNGKey(0)
    B = 2
    win_len, win_inc, fft_len = 16, 8, 16
    T_target = 150                                  # 2 frame tiles at t_tile=128 (one ragged)
    L = (T_target - 1) * win_inc + win_len          # 1208 samples
    x = jax.random.normal(key, (B, 1, L), dtype=jnp.float32)

    ref_mags, ref_phase, ref_real, ref_imag = _reference(x, win_len, win_inc, fft_len)
    ref_mags, ref_phase = np.asarray(ref_mags), np.asarray(ref_phase)
    ref_real, ref_imag = np.asarray(ref_real), np.asarray(ref_imag)
    half = fft_len // 2 + 1

    # Tolerances accommodate MXU operand rounding (bf16-class) while still
    # catching any indexing/layout bug (those produce O(1)-O(10) errors).

    # 1) 'real' path, f32 operands (parity mode).
    stft_real = ConvSTFT(win_len, win_inc, fft_len, feature_type="real",
                         compute_dtype=jnp.float32)
    mags, phase = jax.block_until_ready(stft_real(x))
    np.testing.assert_allclose(np.asarray(mags), ref_mags, rtol=5e-2, atol=5e-2)
    mask = ref_mags > 1.0                           # phase of tiny bins is ill-conditioned
    dphi = np.asarray(phase) - ref_phase
    dphi = (dphi + np.pi) % (2.0 * np.pi) - np.pi   # wrap to (-pi, pi]
    assert np.max(np.abs(dphi)[mask]) < 0.15, "phase mismatch"

    # 2) 'complex' path, f32 operands.
    stft_cf32 = ConvSTFT(win_len, win_inc, fft_len, feature_type="complex",
                         compute_dtype=jnp.float32)
    spec = jax.block_until_ready(stft_cf32(x))      # (B, 2*half, T)
    np.testing.assert_allclose(np.asarray(spec[:, :half]), ref_real, rtol=5e-2, atol=5e-2)
    np.testing.assert_allclose(np.asarray(spec[:, half:]), ref_imag, rtol=5e-2, atol=5e-2)

    # 3) 'complex' path, production default (bf16 operands, f32 accumulation).
    stft_cbf16 = ConvSTFT(win_len, win_inc, fft_len, feature_type="complex")
    spec16 = jax.block_until_ready(stft_cbf16(x))
    np.testing.assert_allclose(np.asarray(spec16[:, :half]), ref_real, rtol=1e-1, atol=1e-1)
    np.testing.assert_allclose(np.asarray(spec16[:, half:]), ref_imag, rtol=1e-1, atol=1e-1)

    # 4) fallback path (win_inc does not divide win_len), 'complex', f32.
    wl2, wi2, fft2 = 20, 8, 32
    L2 = 129 * wi2 + wl2
    x2 = jax.random.normal(jax.random.PRNGKey(0), (B, 1, L2), dtype=jnp.float32)
    _, _, ref_real2, ref_imag2 = _reference(x2, wl2, wi2, fft2)
    half2 = fft2 // 2 + 1
    stft_fb = ConvSTFT(wl2, wi2, fft2, feature_type="complex",
                       compute_dtype=jnp.float32)
    spec2 = jax.block_until_ready(stft_fb(x2))
    np.testing.assert_allclose(np.asarray(spec2[:, :half2]), np.asarray(ref_real2),
                               rtol=5e-2, atol=5e-2)
    np.testing.assert_allclose(np.asarray(spec2[:, half2:]), np.asarray(ref_imag2),
                               rtol=5e-2, atol=5e-2)

    print("KERNEL_OK")
</pallas_src>

<mosaic_0001>
module attributes {stable_mosaic.version = 11 : i64} {
  func.func @kernel(%arg0: i32, %arg1: i32, %arg2: memref<1x8x128xf32, #tpu.memory_space<vmem>>, %arg3: memref<1x8x128xf32, #tpu.memory_space<vmem>>, %arg4: memref<32x16xf32, #tpu.memory_space<vmem>>, %arg5: memref<1x9x128xf32, #tpu.memory_space<vmem>>, %arg6: memref<1x9x128xf32, #tpu.memory_space<vmem>>, %arg7: memref<16x128xf32, #tpu.memory_space<vmem>>) attributes {dimension_semantics = [#tpu.dimension_semantics<parallel>, #tpu.dimension_semantics<parallel>], iteration_bounds = array<i64: 2, 2>, scalar_prefetch = 0 : i64, scratch_operands = 1 : i64, tpu.core_type = #tpu.core_type<tc>, window_params = [{transform_indices = @transform_0, window_bounds = array<i64: 1, 8, 128>}, {transform_indices = @transform_1, window_bounds = array<i64: 1, 8, 128>}, {pipeline_mode = #tpu.pipeline_mode<synchronous>, transform_indices = @transform_2, window_bounds = array<i64: 32, 16>}, {transform_indices = @transform_3, window_bounds = array<i64: 1, 9, 128>}, {transform_indices = @transform_4, window_bounds = array<i64: 1, 9, 128>}]} {
    %c0 = arith.constant 0 : index
    %c0_0 = arith.constant 0 : index
    %c0_1 = arith.constant 0 : index
    %0 = vector.load %arg2[%c0, %c0_0, %c0_1] : memref<1x8x128xf32, #tpu.memory_space<vmem>>, vector<1x8x128xf32>
    %1 = vector.shape_cast %0 : vector<1x8x128xf32> to vector<8x128xf32>
    %c0_2 = arith.constant 0 : index
    %c0_3 = arith.constant 0 : index
    %c0_4 = arith.constant 0 : index
    %2 = vector.load %arg3[%c0_2, %c0_3, %c0_4] : memref<1x8x128xf32, #tpu.memory_space<vmem>>, vector<1x8x128xf32>
    %3 = vector.shape_cast %2 : vector<1x8x128xf32> to vector<8x128xf32>
    %4 = tpu.concatenate %1, %3 in 1 : vector<8x128xf32>, vector<8x128xf32> -> vector<8x256xf32>
    %c0_5 = arith.constant 0 : index
    %c0_6 = arith.constant 0 : index
    %5 = vector.load %arg7[%c0_5, %c0_6] : memref<16x128xf32, #tpu.memory_space<vmem>>, vector<8x128xf32>
    tpu.vector_store %arg7[%c0_5, %c0_6], %1 {strides = array<i32>} : memref<16x128xf32, #tpu.memory_space<vmem>>, vector<8x128xf32>,
    %6 = vector.extract_strided_slice %4 {offsets = [0, 1], sizes = [8, 128], strides = [1, 1]} : vector<8x256xf32> to vector<8x128xf32>
    %c8 = arith.constant 8 : index
    %c0_7 = arith.constant 0 : index
    %7 = vector.load %arg7[%c8, %c0_7] : memref<16x128xf32, #tpu.memory_space<vmem>>, vector<8x128xf32>
    tpu.vector_store %arg7[%c8, %c0_7], %6 {strides = array<i32>} : memref<16x128xf32, #tpu.memory_space<vmem>>, vector<8x128xf32>,
    %c0_8 = arith.constant 0 : index
    %c0_9 = arith.constant 0 : index
    %8 = vector.load %arg7[%c0_8, %c0_9] : memref<16x128xf32, #tpu.memory_space<vmem>>, vector<16x128xf32>
    %c0_10 = arith.constant 0 : index
    %c0_11 = arith.constant 0 : index
    %9 = vector.load %arg4[%c0_10, %c0_11] : memref<32x16xf32, #tpu.memory_space<vmem>>, vector<32x16xf32>
    %cst = arith.constant dense<0.000000e+00> : vector<32x128xf32>
    %10 = tpu.matmul %9, %8, %cst {dimension_numbers = #tpu.dot_dimension_numbers<[1], [0], [0], [1], [0, 0, 1, 1], [], []>} : vector<32x16xf32>, vector<16x128xf32>, vector<32x128xf32> -> vector<32x128xf32>
    %11 = vector.extract_strided_slice %10 {offsets = [0, 0], sizes = [9, 128], strides = [1, 1]} : vector<32x128xf32> to vector<9x128xf32>
    %12 = vector.extract_strided_slice %10 {offsets = [16, 0], sizes = [9, 128], strides = [1, 1]} : vector<32x128xf32> to vector<9x128xf32>
    %13 = arith.mulf %11, %11 : vector<9x128xf32>
    %14 = arith.mulf %12, %12 : vector<9x128xf32>
    %15 = arith.addf %13, %14 : vector<9x128xf32>
    %16 = math.sqrt %15 : vector<9x128xf32>
    %c0_12 = arith.constant 0 : index
    %c0_13 = arith.constant 0 : index
    %c0_14 = arith.constant 0 : index
    %17 = vector.load %arg5[%c0_12, %c0_13, %c0_14] : memref<1x9x128xf32, #tpu.memory_space<vmem>>, vector<1x9x128xf32>
    %18 = vector.shape_cast %17 : vector<1x9x128xf32> to vector<9x128xf32>
    %19 = vector.shape_cast %16 : vector<9x128xf32> to vector<1x9x128xf32>
    tpu.vector_store %arg5[%c0_12, %c0_13, %c0_14], %19 {strides = array<i32>} : memref<1x9x128xf32, #tpu.memory_space<vmem>>, vector<1x9x128xf32>,
    %20 = math.atan2 %12, %11 : vector<9x128xf32>
    %c0_15 = arith.constant 0 : index
    %c0_16 = arith.constant 0 : index
    %c0_17 = arith.constant 0 : index
    %21 = vector.load %arg6[%c0_15, %c0_16, %c0_17] : memref<1x9x128xf32, #tpu.memory_space<vmem>>, vector<1x9x128xf32>
    %22 = vector.shape_cast %21 : vector<1x9x128xf32> to vector<9x128xf32>
    %23 = vector.shape_cast %20 : vector<9x128xf32> to vector<1x9x128xf32>
    tpu.vector_store %arg6[%c0_15, %c0_16, %c0_17], %23 {strides = array<i32>} : memref<1x9x128xf32, #tpu.memory_space<vmem>>, vector<1x9x128xf32>,
    return
  }
  func.func @transform_0(%arg0: i32, %arg1: i32) -> (i32, i32, i32) {
    %c0_i32 = arith.constant 0 : i32
    %c0_i32_0 = arith.constant 0 : i32
    return %arg0, %c0_i32, %arg1 : i32, i32, i32
  }
  func.func @transform_1(%arg0: i32, %arg1: i32) -> (i32, i32, i32) {
    %c1_i32 = arith.constant 1 : i32
    %0 = arith.addi %arg1, %c1_i32 : i32
    %c1_i32_0 = arith.constant 1 : i32
    %1 = arith.muli %0, %c1_i32_0 : i32
    %c0_i32 = arith.constant 0 : i32
    %c0_i32_1 = arith.constant 0 : i32
    return %arg0, %c0_i32, %1 : i32, i32, i32
  }
  func.func @transform_2(%arg0: i32, %arg1: i32) -> (i32, i32) {
    %c0_i32 = arith.constant 0 : i32
    %c0_i32_0 = arith.constant 0 : i32
    %c0_i32_1 = arith.constant 0 : i32
    return %c0_i32, %c0_i32_0 : i32, i32
  }
  func.func @transform_3(%arg0: i32, %arg1: i32) -> (i32, i32, i32) {
    %c0_i32 = arith.constant 0 : i32
    %c0_i32_0 = arith.constant 0 : i32
    return %arg0, %c0_i32, %arg1 : i32, i32, i32
  }
  func.func @transform_4(%arg0: i32, %arg1: i32) -> (i32, i32, i32) {
    %c0_i32 = arith.constant 0 : i32
    %c0_i32_0 = arith.constant 0 : i32
    return %arg0, %c0_i32, %arg1 : i32, i32, i32
  }
}

</mosaic_0001>

<bundles_post_ra>
// kernel: tpu_custom_call.1
= control target key start
LH: loop header
LB: loop body
LE: loop exit
PB: predicated region body
PF: predicated region fallthrough
CT: control target
= control target key end

     0   :  { %10 = vsyncpa [#allocation4], 0  ;;  %s1265_s0 = inlined_call_operand.vmem [shape: f32[2,8,384], index: 0, kind: input, shape index: {}]   ;;  %s1266_s1 = inlined_call_operand.hbm [shape: f32[2,8,384], index: 1, kind: input, shape index: {}]   ;;  %s1267_s2 = inlined_call_operand.vmem [shape: f32[32,16], index: 2, kind: input, shape index: {}]   ;;  %s1268_s3 = inlined_call_operand.vmem [shape: f32[2,9,150], index: 3, kind: output, shape index: {0}]   ;;  %s1269_s4 = inlined_call_operand.vmem [shape: f32[2,9,150], index: 4, kind: output, shape index: {1}]  }
   0x1   :  { %12 = vsyncpa [#allocation4 + $0x1], 0  ;;  %s1012_s15 = smov 0   ;;  %s1014_s16 = smov 0  }
   0x2   :  { %s1016_s17 = smov 0   ;;  %s1018_s18 = smov 0  }
   0x3   :  { %s1020_s19 = smov 0   ;;  %s1022_s20 = smov 0  }
   0x4   :  { %s1024_s21 = smov 0   ;;  %s1026_s22 = smov 0  }
   0x5   :  { %s1028_s23 = smov 0   ;;  %s1030_s24 = smov 0  }
   0x6 LB: > { %1274 = sst [smem:[#allocation8_spill]] %s961_s19  ;;  %s728_s25 = sadd.s32 4294967295, %s981_s24   ;;  %s981_s24 = sphi %s1030_s24, %s18_s24   ;;  %s977_s23 = sphi %s1028_s23, %s1287_s23   ;;  %s973_s22 = sphi %s1026_s22, %s1293_s22   ;;  %s969_s21 = sphi %s1024_s21, %s1285_s21   ;;  %s965_s20 = sphi %s1022_s20, %s1292_s20   ;;  %s961_s19 = sphi %s1020_s19, %s1284_s19   ;;  %s957_s18 = sphi %s1018_s18, %s1291_s18   ;;  %s953_s17 = sphi %s1016_s17, %s1290_s17   ;;  %s949_s16 = sphi %s1014_s16, %s1289_s16   ;;  %s945_s15 = sphi %s1012_s15, %s1288_s15  }
   0x7   : > { %1275 = sst [smem:[#allocation9_spill]] %s977_s23  ;;  %s27_s26 = sadd.s32 1, %s973_s22 }
   0x8   : > { %p28_p0 = scmp.ge.s32.totalorder %s27_s26, 2  ;;  %s30_s27 = sadd.s32 1, %s977_s23 }
   0x9   : > { %s69_s28 = sadd.s32 1, %s961_s19  ;;  %p76_p1 = scmp.ne.s32.totalorder %s961_s19, %s957_s18 }
   0xa   : > { %s1066_s29 = scalar_select %p28_p0, 0, %s27_s26  }
   0xb   : > { %s1295_s27 = smov (!%p28_p0, %s30_s27), %s977_s23  ;;  %p77_p2 = scmp.eq.s32.totalorder %s981_s24, 0 }
   0xc   : > { %1276 = sst [smem:[#allocation10_spill]] %s1066_s29  ;;  %s63_s30 = sadd.s32 1, %s1066_s29 }
   0xd   : > { %p32_p3 = scmp.ge.s32.totalorder %s1295_s27, 2  ;;  %s65_s5 = ssub.s32 %s27_s26, %s63_s30 }
   0xe   : > { %p1071_p4 = por %p77_p2, %p76_p1  ;;  %p82_p5 = scmp.ne.s32.totalorder %s957_s18, %s953_s17 }
   0xf   : > { %s1297_s27 = smov (%p32_p3, %s1295_s27), 0  ;;  %p83_p6 = scmp.eq.s32.totalorder %s728_s25, 0 }
  0x10   : > { %1278 = sst [smem:[#allocation11_spill]] %s1297_s27  ;;  %s114_s7 = ssub.s32 %s973_s22, %s1066_s29 }
  0x11   : > { %s64_s8 = ssub.s32 %s977_s23, %s1297_s27  ;;  %s118_s9 = sadd.s32 1, %s949_s16 }
  0x12   : > { %s66_s10 = sor.u32 %s65_s5, %s64_s8  ;;  %p1083_p7 = por %p83_p6, %p82_p5 }
  0x13   : > { %p67_p8 = scmp.eq.s32.totalorder %s66_s10, 0  ;;  %s115_s12 = sor.u32 %s114_s7, %s64_s8 }
  0x14   : > { %p116_p9 = scmp.eq.s32.totalorder %s115_s12, 0  ;;  %p128_p10 = scmp.ne.s32.totalorder %s949_s16, %s945_s15 }
  0x15   : > { %s1090_s13 = scalar_select %p67_p8, %s961_s19, %s69_s28  }
  0x16   : > { %s1093_s14 = scalar_select %p116_p9, %s949_s16, %s118_s9  }
  0x17   : > { %1280 = sst [smem:[#allocation12_spill]] %s1090_s13  ;;  %p129_p11 = scmp.eq.s32.totalorder %s728_s25, 3 }
  0x18   : > { %p778_p12 = scmp.lt.s32.totalorder %s981_s24, 4  ;;  %s197_s17 = sand.u32 1, %s961_s19  }
  0x19   : > { %p1097_p13 = por %p129_p11, %p128_p10  ;;  %s732_s30 = sshll.u32 %s197_s17, 3 }
  0x1a   : > { %s631_s5 = smul.u32 3, %s977_s23  ;;  %p1104_p0 = pnand %p778_p12, %p1071_p4 }
  0x1b   : > { %s201_s7 = scalar_lea.vmem [#allocation3], %s732_s30  ;;  %p734_p1 = scmp.ge.s32.totalorder %s981_s24, 1 }
  0x1c   : > { %s632_s28 = sadd.s32 %s973_s22, %s631_s5  ;;  %s211_s8 = sshll.u32 %s201_s7, 4  ;;  %s212_s8 = int_to_ptr.vmem [resolvable:$true] %s211_s8 }
  0x1d   : > { %s733_s9 = sshll.u32 %s632_s28, 7  ;;  %s198_s13 = scalar_lea.sflag [#allocation4], %s197_s17 }
  0x1e   : > { %s634_s27 = scalar_lea.hbm %s1266_s1, %s733_s9  ;;  %p872_p2 = pneg %p1104_p0 }
  0x1f   : > { %s635_s29 = scalar_lea.hbm %s634_s27, 128  ;;  %s883_s6 = scalar_lea.vmem %s212_s8, 128 }
  0x20   : > { %p884_p3 = scmp.ne.s32.totalorder %s212_s8, %s883_s6  ;;  %s983_s23 = smov [#allocation3]  }
  0x21   : > { %s888_s19 = sshll.u32 %s983_s23, 4  ;;  %s889_s19 = int_to_ptr.vmem [resolvable:$false] %s888_s19 }
  0x22   : > { %p886_p4 = pnand %p884_p3, %p872_p2  ;;  %s890_s30 = scalar_lea.vmem %s889_s19, 256 }
  0x23   : > { %p891_p6 = scmp.lt.s32.totalorder %s212_s8, %s889_s19  ;;  %p892_p8 = scmp.lt.s32.totalorder %s890_s30, %s883_s6 }
  0x24   : > { %p887_p5 = pneg %p886_p4 }
  0x25   : > { %p893_p9 = por %p892_p8, %p891_p6 }
  0x27   : > { %p894_p10 = pnand %p893_p9, %p887_p5 }
  0x29   : > { %897 = shalt.err (!%p894_p10)
}
  0x2a   : > { %777 = dma.hbm_to_vmem [thread:$0]  (!%p1104_p0), %s635_s29, 128, %s212_s8, %s198_s13  }
  0x2b   : > { %p216_p11 = scmp.lt.s32.totalorder %s981_s24, 5 }
  0x2d   : > { %p217_p12 = pnand %p734_p1, %p216_p11 }
  0x2e   : > { %s222_s27 = sand.u32 (!%p217_p12), 1, %s957_s18  }
  0x2f   : > { %220 = sbr.rel (%p217_p12) target bundleno = 462 (0x1ce), region = 32  ;;  %s735_s23 = sshll.u32 (!%p217_p12), %s222_s27, 3 }
  0x30   : > { %s223_s17 = scalar_lea.sflag (!%p217_p12), [#allocation4], %s222_s27  ;;  %s226_s5 = scalar_lea.vmem (!%p217_p12), [#allocation3], %s735_s23 }
  0x34   : > { %940 = dma.done.wait (%p1083_p7), %s223_s17, 128  }
  0x35   : > { %942 = vsyncadd (%p1083_p7), %s223_s17, 4294967168  ;;  %p262_p0 = scmp.lt.s32.totalorder %s969_s21, 1  ;;  %p264_p2 = scmp.lt.s32.totalorder %s965_s20, 2  ;;  %vm290_vm0 = vcmask 130048   ;;  %v286_v0 = vld [vmem:[%s1267_s2] sm:$0xff]  ;;  %v288_v1 = vld [vmem:[%s1267_s2 + $0x10] sm:$0xff] }
  0x36   : > { %761 = vmatprep.mubr.msk.f32.mxu0 %vm290_vm0, %v286_v0  ;;  %764 = vmatprep.mubr.msk.f32.mxu1 %vm290_vm0, %v288_v1  ;;  %s984_s30 = smov 127   ;;  %v272_v3 = vld [vmem:[%s226_s5] sm:$0xff]  ;;  %vm280_vm1 = vcmask 1039360   ;;  %v289_v8 = vld [vmem:[%s1267_s2 + $0x18] sm:$0xff]  ;;  %s253_s5 = sand.u32 1, %s945_s15  }
  0x37   : > { %s263_s19 = scalar_select %p262_p0, %s969_s21, 1  ;;  %v287_v7 = vld [vmem:[%s1267_s2 + $0x8] sm:$0xff] }
  0x38   : > { %s265_s29 = scalar_select %p264_p2, %s965_s20, 2 }
  0x39   : > { %s771_s13 = smul.u32 3, %s263_s19 }
  0x3b   : > { %s267_s10 = sadd.s32 %s771_s13, %s265_s29  ;;  %s1181_s29 = sshll.u32 %s253_s5, 4 }
  0x3c   : > { %s738_s28 = sshll.u32 %s267_s10, 3  ;;  %s1186_s13 = scalar_lea.vmem [#allocation5], %s1181_s29 }
  0x3d   : > { %s269_s6 = scalar_lea.vmem %s1265_s0, %s738_s28  ;;  %s261_s15 = scalar_lea.vmem [#allocation6], %s1181_s29 }
  0x3e   : > { %v271_v2 = vld [vmem:[%s269_s6] sm:$0xff]  ;;  %s745_s10 = sshll.u32 (%p1097_p13), %s969_s21, 2 }
  0x3f   : > { %276 = vrot.lane.b32.xlu0 %v271_v2, %s984_s30  ;;  %s518_s28 = sadd.s32 (%p1097_p13), %s965_s20, %s745_s10 }
  0x40   : > { %s746_s7 = sshll.u32 (%p1097_p13), %s518_s28, 3 }
  0x41   : > { %s520_s25 = scalar_lea.vmem (%p1097_p13), %s1268_s3, %s746_s7 }
  0x43   : > { %278 = vrot.lane.b32.xlu0 %v272_v3, %s984_s30 }
  0xb1   : > { %v277_v4 = vpop.permute.xlu0 %276 }
  0xb5   : > { %v279_v5 = vpop.permute.xlu0 %278 }
  0xb6   : > { %v281_v6 = vsel %vm280_vm1, %v277_v4, %v279_v5 }
  0xb7   : > { %757 = vmatprep.subr.mxu0 %v281_v6  ;;  %767 = vmatprep.subr.mxu1 %v281_v6 }
  0xb8   : > { %758 = vmatpush3.msra.mxu0 %v281_v6  ;;  %769 = vmatpush3.msra.mxu1 %v281_v6 }
  0xb9   : > { %759 = vmatprep.subr.mxu0 %v271_v2  ;;  %768 = vmatprep.subr.mxu1 %v271_v2 }
  0xba   : > { %760 = vmatpush3.msra.mxu0 %v271_v2  ;;  %770 = vmatpush3.msra.mxu1 %v271_v2 }
  0xbb   : > { %762 = vmatmul.mubr.msk.f32.vlgmr.msra.gmra.mxu0 %vm290_vm0, %v287_v7  ;;  %765 = vmatmul.mubr.msk.f32.vlgmr.msra.gmra.mxu1 %vm290_vm0, %v289_v8 }
 0x17b   : > { %v1148_v9 = vpop.f32.mrf.mxu0  ;;  %v1150_v10 = vpop.f32.mrf.mxu1 }
 0x17c   : > { %v389_v11 = vmul.f32 %v1148_v9, %v1148_v9  ;;  %v1155_v12 = vand.u32 2147483647, %v1148_v9  ;;  %v391_v13 = vmul.f32 %v1150_v10, %v1150_v10  ;;  %v1160_v14 = vand.u32 2147483647, %v1150_v10 }
 0x17d   : > { %v1162_v15 = vpop.f32.mrf.mxu0  ;;  %v1166_v18 = vpop.f32.mrf.mxu1  ;;  %vm487_vm7 = vcmp.lt.s32.totalorder %v1148_v9, 0  ;;  %vm491_vm8 = vcmp.ne.f32.partialorder %v1148_v9, %v1148_v9  ;;  %vm492_vm9 = vcmp.ne.f32.partialorder %v1150_v10, %v1150_v10  ;;  %vm484_vm10 = vcmp.lt.f32.partialorder %v1148_v9, 0.0 }
 0x17e   : > { %v393_v16 = vadd.f32 %v391_v13, %v389_v11  ;;  %v460_v17 = vmax.f32 %v1155_v12, %v1160_v14  ;;  %v388_v19 = vmul.f32 %v1162_v15, %v1162_v15  ;;  %v1171_v20 = vand.u32 2147483647, %v1162_v15  ;;  %vm493_vm14 = vmor %vm491_vm8, %vm492_vm9 }
 0x17f   : > { %v390_v21 = vmul.f32 %v1166_v18, %v1166_v18  ;;  %v1176_v22 = vand.u32 2147483647, %v1166_v18  ;;  %v459_v26 = vmin.f32 %v1155_v12, %v1160_v14  ;;  %vm481_vm6 = vcmp.gt.f32.partialorder %v1160_v14, %v1155_v12 }
 0x180   : > { %862 = vrsqrt.f32 %v393_v16  ;;  %vm403_vm2 = vcmp.eq.f32.partialorder %v393_v16, inf  ;;  %v406_v30 = vand.u32 2147483648, %v393_v16  ;;  %vm405_vm3 = vcmp.eq.f32.partialorder %v393_v16, 0.0 }
 0x181   : > { %864 = vrcp.f32 %v460_v17  ;;  %v392_v23 = vadd.f32 %v390_v21, %v388_v19  ;;  %v413_v24 = vmax.f32 %v1171_v20, %v1176_v22  ;;  %v412_v35 = vmin.f32 %v1171_v20, %v1176_v22 }
 0x182   : > { %vm497_vm11 = vcmp.eq.s32.totalorder %v1155_v12, inf  ;;  %vm498_vm12 = vcmp.eq.s32.totalorder %v1160_v14, inf  ;;  %vm489_vm13 = vcmp.eq.f32.partialorder %v1150_v10, 0.0  ;;  %vm434_vm15 = vcmp.gt.f32.partialorder %v1176_v22, %v1171_v20 }
 0x183   : > { %866 = vrsqrt.f32 %v392_v23  ;;  %vm396_vm4 = vcmp.eq.f32.partialorder %v392_v23, inf  ;;  %v399_v39 = vand.u32 2147483648, %v392_v23  ;;  %vm398_vm5 = vcmp.eq.f32.partialorder %v392_v23, 0.0  ;;  %vm499_vm1 = vmand %vm497_vm11, %vm498_vm12 }
 0x184   : > { %868 = vrcp.f32 %v413_v24  ;;  %vm440_vm0 = vcmp.lt.s32.totalorder %v1162_v15, 0 }
 0x18d   : > { %v863_v25 = vpop.eup %862 }
 0x18e   : > { %v865_v27 = vpop.eup %864  ;;  %v402_v28 = vmul.f32 %v863_v25, %v393_v16  ;;  %v985_v25 = vmov 0.0  }
 0x18f   : > { %v462_v29 = vmul.f32 %v865_v27, %v459_v26  ;;  %v488_v26 = vsel %vm487_vm7, 3.1415927, %v985_v25  ;;  %vm442_vm7 = vcmp.eq.f32.partialorder %v1166_v18, 0.0 }
 0x190   : > { %v404_v31 = vsel %vm403_vm2, %v393_v16, %v402_v28  ;;  %v867_v34 = vpop.eup %866  ;;  %v502_v28 = vand.u32 2147483648, %v1150_v10  ;;  %vm444_vm2 = vcmp.ne.f32.partialorder %v1162_v15, %v1162_v15 }
 0x191   : > { %v463_v32 = vmul.f32 %v462_v29, %v462_v29  ;;  %v407_v33 = vsel %vm405_vm3, %v406_v30, %v404_v31  ;;  %v869_v36 = vpop.eup %868  ;;  %v395_v38 = vmul.f32 %v867_v34, %v392_v23  ;;  %v986_v30 = vmov 0.7853982  }
 0x192   : > { %409 = vst [vmem:[%s1186_s13 + $0x8] sm:$0x1] %v407_v33  ;;  %v415_v40 = vmul.f32 %v869_v36, %v412_v35  ;;  %v496_v31 = vsel %vm484_vm10, 2.3561945, %v986_v30  ;;  %vm445_vm3 = vcmp.ne.f32.partialorder %v1166_v18, %v1166_v18  ;;  %v441_v34 = vsel %vm440_vm0, 3.1415927, %v985_v25 }
 0x193   : > { %v464_v37 = vmul.f32 0.002785687, %v463_v32  ;;  %v397_v42 = vsel %vm396_vm4, %v392_v23, %v395_v38  ;;  %vm437_vm4 = vcmp.lt.f32.partialorder %v1162_v15, 0.0  ;;  %vm446_vm8 = vmor %vm444_vm2, %vm445_vm3  ;;  %v455_v15 = vand.u32 2147483648, %v1166_v18 }
 0x194   : > { %v400_v43 = vsel %vm398_vm5, %v399_v39, %v397_v42  ;;  %v416_v44 = vmul.f32 %v415_v40, %v415_v40  ;;  %vm450_vm5 = vcmp.eq.s32.totalorder %v1171_v20, inf }
 0x195   : > { %v465_v41 = vadd.f32 -0.015866, %v464_v37  ;;  %408 = vst [vmem:[%s1186_s13] sm:$0xff] %v400_v43  ;;  %v449_v37 = vsel %vm437_vm4, 2.3561945, %v986_v30 }
 0x196   : > { %v417_v46 = vmul.f32 0.002785687, %v416_v44 }
 0x197   : > { %v466_v45 = vmul.f32 %v465_v41, %v463_v32 }
 0x198   : > { %v418_v48 = vadd.f32 -0.015866, %v417_v46 }
 0x199   : > { %v467_v47 = vadd.f32 0.04247222, %v466_v45 }
 0x19a   : > { %v419_v50 = vmul.f32 %v418_v48, %v416_v44 }
 0x19b   : > { %v468_v49 = vmul.f32 %v467_v47, %v463_v32 }
 0x19c   : > { %v420_v52 = vadd.f32 0.04247222, %v419_v50  ;;  %v551_v20 = vld [vmem:[%s1186_s13] sm:$0xff] (%p1097_p13) }
 0x19d   : > { %v469_v51 = vadd.f32 -0.074975304, %v468_v49  ;;  %552 = vst [vmem:[%s520_s25] sm:$0xff] (%p1097_p13), %v551_v20 }
 0x19e   : > { %v421_v54 = vmul.f32 %v420_v52, %v416_v44 }
 0x19f   : > { %v470_v53 = vmul.f32 %v469_v51, %v463_v32 }
 0x1a0   : > { %v422_v56 = vadd.f32 -0.074975304, %v421_v54 }
 0x1a1   : > { %v471_v55 = vadd.f32 0.1064488, %v470_v53 }
 0x1a2   : > { %v423_v58 = vmul.f32 %v422_v56, %v416_v44 }
 0x1a3   : > { %v472_v57 = vmul.f32 %v471_v55, %v463_v32 }
 0x1a4   : > { %v424_v60 = vadd.f32 0.1064488, %v423_v58 }
 0x1a5   : > { %v473_v59 = vadd.f32 -0.14207031, %v472_v57 }
 0x1a6   : > { %v425_v62 = vmul.f32 %v424_v60, %v416_v44 }
 0x1a7   : > { %v474_v61 = vmul.f32 %v473_v59, %v463_v32 }
 0x1a8   : > { %v426_v0 = vadd.f32 -0.14207031, %v425_v62 }
 0x1a9   : > { %v475_v63 = vadd.f32 0.19993454, %v474_v61 }
 0x1aa   : > { %v427_v2 = vmul.f32 %v426_v0, %v416_v44 }
 0x1ab   : > { %v476_v1 = vmul.f32 %v475_v63, %v463_v32 }
 0x1ac   : > { %v428_v4 = vadd.f32 0.19993454, %v427_v2 }
 0x1ad   : > { %v477_v3 = vadd.f32 -0.33333147, %v476_v1 }
 0x1ae   : > { %v429_v6 = vmul.f32 %v428_v4, %v416_v44 }
 0x1af   : > { %v478_v5 = vmul.f32 %v477_v3, %v463_v32 }
 0x1b0   : > { %v430_v8 = vadd.f32 -0.33333147, %v429_v6 }
 0x1b1   : > { %v479_v7 = vmul.f32 %v478_v5, %v462_v29 }
 0x1b2   : > { %v431_v13 = vmul.f32 %v430_v8, %v416_v44 }
 0x1b3   : > { %v480_v11 = vadd.f32 %v479_v7, %v462_v29 }
 0x1b4   : > { %v432_v17 = vmul.f32 %v431_v13, %v415_v40 }
 0x1b5   : > { %v482_v16 = vsub.f32 1.5707964, %v480_v11 }
 0x1b6   : > { %v433_v23 = vadd.f32 %v432_v17, %v415_v40 }
 0x1b7   : > { %v483_v19 = vsel %vm481_vm6, %v482_v16, %v480_v11  ;;  %vm451_vm6 = vcmp.eq.s32.totalorder %v1176_v22, inf  ;;  %v553_v22 = vld [vmem:[%s1186_s13 + $0x8] sm:$0xff] (%p1097_p13) }
 0x1b8   : > { %v485_v21 = vsub.f32 3.1415927, %v483_v19  ;;  %v435_v27 = vsub.f32 1.5707964, %v433_v23  ;;  %vm452_vm9 = vmand %vm450_vm5, %vm451_vm6  ;;  %554 = vst [vmem:[%s520_s25 + $0x10] sm:$0xff] (%p1097_p13), %v553_v22 }
 0x1ba   : > { %v486_v24 = vsel %vm484_vm10, %v485_v21, %v483_v19  ;;  %v436_v14 = vsel %vm434_vm15, %v435_v27, %v433_v23 }
 0x1bb   : > { %v490_v29 = vsel %vm489_vm13, %v488_v26, %v486_v24  ;;  %v438_v33 = vsub.f32 3.1415927, %v436_v14 }
 0x1bc   : > { %v494_v9 = vsel %vm493_vm14, nan, %v490_v29 }
 0x1bd   : > { %v500_v32 = vsel %vm499_vm1, %v496_v31, %v494_v9  ;;  %v439_v12 = vsel %vm437_vm4, %v438_v33, %v436_v14 }
 0x1be   : > { %v501_v10 = vand.u32 2147483647, %v500_v32  ;;  %v443_v36 = vsel %vm442_vm7, %v441_v34, %v439_v12 }
 0x1bf   : > { %v447_v38 = vsel %vm446_vm8, nan, %v443_v36 }
 0x1c0   : > { %v503_v35 = vor.u32 %v502_v28, %v501_v10  ;;  %v453_v39 = vsel %vm452_vm9, %v449_v37, %v447_v38 }
 0x1c1   : > { %v454_v40 = vand.u32 2147483647, %v453_v39  ;;  %516 = sbr.rel (!%p1097_p13) target bundleno = 454 (0x1c6), region = 40 }
 0x1c2   : > { %505 = vst [vmem:[%s261_s15 + $0x8] sm:$0x1] %v503_v35 }
 0x1c3   : > { %v456_v41 = vor.u32 %v455_v15, %v454_v40 }
 0x1c5   : > { %504 = vst [vmem:[%s261_s15] sm:$0xff] %v456_v41 }
 0x1c6 PF: > { %560 = sbr.rel (!%p1097_p13) target bundleno = 462 (0x1ce), region = 78  ;;  %s747_s11 = sshll.u32 (%p1097_p13), %s969_s21, 2 }
 0x1c7   : > { %s562_s12 = sadd.s32 (%p1097_p13), %s965_s20, %s747_s11 }
 0x1c8   : > { %s748_s6 = sshll.u32 (%p1097_p13), %s562_s12, 3 }
 0x1c9   : > { %v597_v42 = vld [vmem:[%s261_s15 + $0x8] sm:$0xff] (%p1097_p13)  ;;  %s564_s23 = scalar_lea.vmem (%p1097_p13), %s1269_s4, %s748_s6 }
 0x1ca   : > { %598 = vst [vmem:[%s564_s23 + $0x10] sm:$0xff] (%p1097_p13), %v597_v42 }
 0x1cc   : > { %v595_v18 = vld [vmem:[%s261_s15] sm:$0xff] }
 0x1cd   : > { %596 = vst [vmem:[%s564_s23] sm:$0xff] %v595_v18 }
 0x1ce PF: > { %s18_s24 = sadd.s32 1, %s981_s24   ;;  %s1283_s26 = sld [smem:[#allocation8_spill]] }
 0x1cf   : > { %p15_p7 = scmp.ge.s32.totalorder %s18_s24, 6   ;;  %s1284_s19 = sld [smem:[#allocation12_spill]] }
 0x1d0   : > { %s1285_s21 = sld [smem:[#allocation9_spill]]  ;;  %s1288_s15 = smov %s949_s16 }
 0x1d1   : > { %s1286_s5 = sld [smem:[#allocation10_spill]]  ;;  %s1289_s16 = smov %s1093_s14 }
 0x1d2   : > { %s1287_s23 = sld [smem:[#allocation11_spill]]  ;;  %s1290_s17 = smov %s957_s18 }
 0x1d3   : > { %s1292_s20 = smov %s973_s22  ;;  %17 = sbr.rel (!%p15_p7) target bundleno = 6 (0x6), region = 163 }
 0x1d4   : > { %s1291_s18 = smov %s1283_s26 }
 0x1d7   : > { %s1293_s22 = smov %s1286_s5 }
 0x1d8   :  { %621 = vsyncpa [#allocation4], 1 }
 0x1d9   :  { %623 = vsyncpa [#allocation4 + $0x1], 1 }

</bundles_post_ra>
